<compile_context>
chip_gen: v7x
topology: tpu7x:2x2x1
jax: 0.10.0
libtpu: 0.0.40
codegen_flags: <defaults>
</compile_context>

<pallas_src>
import functools

import jax
import jax.numpy as jnp
from jax import lax
from jax.experimental import pallas as pl
from jax.experimental.pallas import tpu as pltpu


def _round_up(x, m):
    return (x + m - 1) // m * m


def lstm_classifier_kernel(tok_ref, lastidx_ref, tproj_ref, w_hh_ref,
                           w_out_ref, b_out_ref, out_ref, xproj_s, *, seq_len):
    TB = tok_ref.shape[0]                    # T * B_pad
    Vp, G = tproj_ref.shape                  # padded vocab, 4*H
    H = w_hh_ref.shape[0]
    B = TB // seq_len                        # padded batch

    # ---- embedding lookup + input projection, fused as one bf16 MXU matmul ----
    # Each one-hot row sums to exactly 1 (exact in bf16), so the bias folded into the
    # pre-projected table distributes correctly: xproj[(t,b)] = emb[tok] @ W_ih + b.
    tok = tok_ref[...]                                                   # (T*B, 1) int32
    onehot = (tok == lax.broadcasted_iota(jnp.int32, (TB, Vp), 1)
              ).astype(jnp.bfloat16)                                     # (T*B, Vp) bf16
    xproj_s[...] = jnp.dot(onehot, tproj_ref[...],
                           preferred_element_type=jnp.float32)           # (T*B, G) f32

    # ---- recurrence: state lives in vregs (fori_loop carry), not VMEM scratch ----
    last_idx = lastidx_ref[...]              # (B, 1) int32, loaded once
    w_hh = w_hh_ref[...]                     # (H, 4H) f32, loaded once

    def step(t, carry):
        h, c, hsel = carry
        row = pl.multiple_of(t * B, B)
        # single fused (B, H) @ (H, 4H) recurrent matmul per timestep
        pre = xproj_s[pl.ds(row, B), :] + jnp.dot(
            h, w_hh, preferred_element_type=jnp.float32)                 # (B, 4H)
        # full-width transcendentals on the EUP, then slice the gates.
        # PyTorch gate order along the 4H axis: i, f, g, o
        sig = jax.nn.sigmoid(pre)
        tah = jnp.tanh(pre)
        i_g = sig[:, 0 * H:1 * H]
        f_g = sig[:, 1 * H:2 * H]
        g_g = tah[:, 2 * H:3 * H]
        o_g = sig[:, 3 * H:4 * H]
        c_new = f_g * c + i_g * g_g
        h_new = o_g * jnp.tanh(c_new)
        # freeze the hidden state at each row's last valid timestep
        hsel = jnp.where(last_idx == t, h_new, hsel)
        return h_new, c_new, hsel

    z0 = jnp.zeros((B, H), jnp.float32)      # matches init_hidden -> zeros
    _, _, hsel = lax.fori_loop(0, seq_len, step, (z0, z0, z0),
                               unroll=min(seq_len, 8))

    # ---- hidden_to_label + log_softmax(dim=1), lane-dense (C padded to 128) ----
    # Padded label lanes carry -1e30 via b_out, so they contribute ~0 to the denominator.
    logits = jnp.dot(hsel, w_out_ref[...],
                     preferred_element_type=jnp.float32) + b_out_ref[...]   # (B, C_pad)
    m = jnp.max(logits, axis=1, keepdims=True)
    z = logits - m
    lse = jnp.log(jnp.sum(jnp.exp(z), axis=1, keepdims=True))
    out_ref[...] = z - lse


@jax.jit
def lstm_classifier_forward(tokens, lengths, params):
    """tokens: (T, B) int32 time-major; lengths: (B,) int32. Returns (B, C) log-probs.

    NOTE: lengths must be >= 1 (PyTorch pack_padded_sequence rejects zero lengths);
    rows with length 0 would silently return log_softmax(b_out).
    NOTE: if importing real PyTorch weights, nn.LSTM stores weight_ih_l0 as (4H, E) and
    weight_hh_l0 as (4H, H) — transpose to the (E, 4H)/(H, 4H) layout expected here.
    """
    T, B = tokens.shape
    emb = params["embedding"].astype(jnp.float32)
    V, E = emb.shape
    H, G = params["w_hh"].shape                  # G = 4 * H
    C = params["w_out"].shape[1]

    B_pad = _round_up(max(B, 8), 8)              # sublane tile
    V_pad = _round_up(V, 128)                    # lane-dense contraction dim for the gather
    C_pad = _round_up(max(C, 128), 128)          # lane-dense classifier head / output

    tok_p = jnp.zeros((T, B_pad), jnp.int32).at[:, :B].set(tokens.astype(jnp.int32))
    tok_flat = tok_p.reshape(T * B_pad, 1)       # one token per sublane row
    last_idx = (jnp.full((B_pad, 1), -1, jnp.int32)
                .at[:B, 0].set(lengths.astype(jnp.int32) - 1))

    # Pre-project the embedding table once (f32), ship to the kernel in bf16.
    table_proj = jnp.dot(emb, params["w_ih"]) + params["b"]              # (V, 4H) f32
    tproj = (jnp.zeros((V_pad, G), jnp.bfloat16)
             .at[:V].set(table_proj.astype(jnp.bfloat16)))

    # Lane-dense head: zero-padded weight columns, -1e30 in padded bias lanes (mask).
    w_out_p = jnp.zeros((H, C_pad), jnp.float32).at[:, :C].set(params["w_out"])
    b_out_p = jnp.full((1, C_pad), -1e30, jnp.float32).at[:, :C].set(params["b_out"])

    vmem = pl.BlockSpec(memory_space=pltpu.MemorySpace.VMEM)
    cost = pl.CostEstimate(
        flops=2 * (T * B_pad * V_pad * G          # one-hot gather matmul
                   + T * B_pad * H * G            # recurrence
                   + B_pad * H * C_pad),          # classifier head
        transcendentals=T * B_pad * 9 * H + B_pad * (C_pad + 1),
        bytes_accessed=(4 * T * B_pad + 4 * B_pad + 2 * V_pad * G + 4 * H * G
                        + 4 * H * C_pad + 4 * C_pad + 4 * B_pad * C_pad),
    )

    out = pl.pallas_call(
        functools.partial(lstm_classifier_kernel, seq_len=T),
        out_shape=jax.ShapeDtypeStruct((B_pad, C_pad), jnp.float32),
        in_specs=[vmem] * 6,
        out_specs=vmem,
        scratch_shapes=[
            pltpu.VMEM((T * B_pad, G), jnp.float32),   # hoisted input projections
        ],
        cost_estimate=cost,
    )(tok_flat, last_idx, tproj, params["w_hh"], w_out_p, b_out_p)
    return out[:B, :C]


def init_params(key, nfeatures, embed_size, hidden_dim, num_classes):
    ks = jax.random.split(key, 7)
    s = 1.0 / jnp.sqrt(hidden_dim)
    G = 4 * hidden_dim
    params = {
        # nn.Embedding(nfeatures, embed_size): N(0,1) init
        "embedding": jax.random.normal(ks[0], (nfeatures, embed_size), jnp.float32),
        # nn.LSTM(embed_size, hidden_dim): gate-concatenated weights, order [i, f, g, o]
        "w_ih": jax.random.uniform(ks[1], (embed_size, G), jnp.float32, -s, s),
        "w_hh": jax.random.uniform(ks[2], (hidden_dim, G), jnp.float32, -s, s),
        # b = b_ih + b_hh combined, gate-concatenated
        "b": (jax.random.uniform(ks[3], (1, G), jnp.float32, -s, s)
              + jax.random.uniform(ks[4], (1, G), jnp.float32, -s, s)),
        # nn.Linear(hidden_dim, num_classes): stored as (H, C) so y = x @ W + b
        "w_out": jax.random.uniform(ks[5], (hidden_dim, num_classes), jnp.float32, -s, s),
        "b_out": jax.random.uniform(ks[6], (1, num_classes), jnp.float32, -s, s),
    }
    return params


if __name__ == "__main__":
    # Small config consistent with the module's __init__
    nfeatures = 50      # classifier_info['nfeatures']
    embed_size = 16     # classifier_info['embed_size']
    hidden_dim = 32     # classifier_info['hidden_dim']
    num_classes = 4     # len(data_info['class_labels'])
    T, B = 8, 2         # seq_len, batch

    key = jax.random.PRNGKey(0)
    pkey, xkey = jax.random.split(key)
    params = init_params(pkey, nfeatures, embed_size, hidden_dim, num_classes)

    tokens = jax.random.randint(xkey, (T, B), 0, nfeatures, dtype=jnp.int32)
    # lengths sorted descending (pack_padded_sequence requirement); max == T
    lengths = jnp.array([8, 5], dtype=jnp.int32)

    out = lstm_classifier_forward(tokens, lengths, params)
    out = jax.block_until_ready(out)
    assert out.shape == (B, num_classes)
    # log_softmax rows should (approximately) sum to 1 in prob space
    assert bool(jnp.all(jnp.abs(jnp.sum(jnp.exp(out), axis=1) - 1.0) < 1e-4))
    print("KERNEL_OK")
</pallas_src>

<mosaic_0001>
module attributes {stable_mosaic.version = 11 : i64} {
  func.func @lstm_classifier_kernel(%arg0: memref<64x1xi32, #tpu.memory_space<vmem>>, %arg1: memref<8x1xi32, #tpu.memory_space<vmem>>, %arg2: memref<128x128xbf16, #tpu.memory_space<vmem>>, %arg3: memref<32x128xf32, #tpu.memory_space<vmem>>, %arg4: memref<32x128xf32, #tpu.memory_space<vmem>>, %arg5: memref<1x128xf32, #tpu.memory_space<vmem>>, %arg6: memref<8x128xf32, #tpu.memory_space<vmem>>, %arg7: memref<64x128xf32, #tpu.memory_space<vmem>>) attributes {dimension_semantics = [], scalar_prefetch = 0 : i64, scratch_operands = 1 : i64, tpu.core_type = #tpu.core_type<tc>} {
    %c0 = arith.constant 0 : index
    %c0_0 = arith.constant 0 : index
    %0 = vector.load %arg0[%c0, %c0_0] : memref<64x1xi32, #tpu.memory_space<vmem>>, vector<64x1xi32>
    %1 = tpu.iota {dimensions = array<i32: 1>} : vector<64x128xi32>
    %2 = vector.broadcast %0 : vector<64x1xi32> to vector<64x128xi32>
    %3 = arith.cmpi eq, %2, %1 : vector<64x128xi32>
    %4 = arith.extui %3 : vector<64x128xi1> to vector<64x128xi32>
    %5 = arith.sitofp %4 : vector<64x128xi32> to vector<64x128xf32>
    %6 = arith.truncf %5 : vector<64x128xf32> to vector<64x128xbf16>
    %c0_1 = arith.constant 0 : index
    %c0_2 = arith.constant 0 : index
    %7 = vector.load %arg2[%c0_1, %c0_2] : memref<128x128xbf16, #tpu.memory_space<vmem>>, vector<128x128xbf16>
    %cst = arith.constant dense<0.000000e+00> : vector<64x128xf32>
    %8 = tpu.matmul %6, %7, %cst {dimension_numbers = #tpu.dot_dimension_numbers<[1], [0], [0], [1], [0, 0, 1, 1], [], []>} : vector<64x128xbf16>, vector<128x128xbf16>, vector<64x128xf32> -> vector<64x128xf32>
    %c0_3 = arith.constant 0 : index
    %c0_4 = arith.constant 0 : index
    %9 = vector.load %arg7[%c0_3, %c0_4] : memref<64x128xf32, #tpu.memory_space<vmem>>, vector<64x128xf32>
    tpu.vector_store %arg7[%c0_3, %c0_4], %8 {strides = array<i32>} : memref<64x128xf32, #tpu.memory_space<vmem>>, vector<64x128xf32>,
    %c0_5 = arith.constant 0 : index
    %c0_6 = arith.constant 0 : index
    %10 = vector.load %arg1[%c0_5, %c0_6] : memref<8x1xi32, #tpu.memory_space<vmem>>, vector<8x1xi32>
    %c0_7 = arith.constant 0 : index
    %c0_8 = arith.constant 0 : index
    %11 = vector.load %arg3[%c0_7, %c0_8] : memref<32x128xf32, #tpu.memory_space<vmem>>, vector<32x128xf32>
    %cst_9 = arith.constant 0.000000e+00 : f32
    %12 = vector.broadcast %cst_9 : f32 to vector<8x32xf32>
    %c0_i32 = arith.constant 0 : i32
    %c8_i32 = arith.constant 8 : i32
    %13 = arith.muli %c0_i32, %c8_i32 : i32
    %14 = tpu.assume_multiple %13, 8 : i32
    %15 = arith.index_cast %14 : i32 to index
    %c0_10 = arith.constant 0 : index
    %16 = vector.load %arg7[%15, %c0_10] : memref<64x128xf32, #tpu.memory_space<vmem>>, vector<8x128xf32>
    %cst_11 = arith.constant dense<0.000000e+00> : vector<8x128xf32>
    %17 = tpu.matmul %12, %11, %cst_11 {dimension_numbers = #tpu.dot_dimension_numbers<[1], [0], [0], [1], [0, 0, 1, 1], [], []>} : vector<8x32xf32>, vector<32x128xf32>, vector<8x128xf32> -> vector<8x128xf32>
    %18 = arith.addf %16, %17 : vector<8x128xf32>
    %19 = arith.negf %18 : vector<8x128xf32>
    %20 = math.exp %19 : vector<8x128xf32>
    %cst_12 = arith.constant 1.000000e+00 : f32
    %21 = vector.broadcast %cst_12 : f32 to vector<8x128xf32>
    %22 = arith.addf %21, %20 : vector<8x128xf32>
    %23 = arith.divf %21, %22 : vector<8x128xf32>
    %24 = math.tanh %18 : vector<8x128xf32>
    %25 = vector.extract_strided_slice %23 {offsets = [0, 0], sizes = [8, 32], strides = [1, 1]} : vector<8x128xf32> to vector<8x32xf32>
    %26 = vector.extract_strided_slice %23 {offsets = [0, 32], sizes = [8, 32], strides = [1, 1]} : vector<8x128xf32> to vector<8x32xf32>
    %27 = vector.extract_strided_slice %24 {offsets = [0, 64], sizes = [8, 32], strides = [1, 1]} : vector<8x128xf32> to vector<8x32xf32>
    %28 = vector.extract_strided_slice %23 {offsets = [0, 96], sizes = [8, 32], strides = [1, 1]} : vector<8x128xf32> to vector<8x32xf32>
    %29 = arith.mulf %26, %12 : vector<8x32xf32>
    %30 = arith.mulf %25, %27 : vector<8x32xf32>
    %31 = arith.addf %29, %30 : vector<8x32xf32>
    %32 = math.tanh %31 : vector<8x32xf32>
    %33 = arith.mulf %28, %32 : vector<8x32xf32>
    %34 = vector.broadcast %c0_i32 : i32 to vector<8x1xi32>
    %35 = arith.cmpi eq, %10, %34 : vector<8x1xi32>
    %36 = vector.shape_cast %35 : vector<8x1xi1> to vector<8x1xi1>
    %37 = vector.broadcast %36 : vector<8x1xi1> to vector<8x32xi1>
    %38 = arith.select %37, %33, %12 : vector<8x32xi1>, vector<8x32xf32>
    %c1_i32 = arith.constant 1 : i32
    %c8_i32_13 = arith.constant 8 : i32
    %39 = arith.muli %c1_i32, %c8_i32_13 : i32
    %40 = tpu.assume_multiple %39, 8 : i32
    %41 = arith.index_cast %40 : i32 to index
    %c0_14 = arith.constant 0 : index
    %42 = vector.load %arg7[%41, %c0_14] : memref<64x128xf32, #tpu.memory_space<vmem>>, vector<8x128xf32>
    %cst_15 = arith.constant dense<0.000000e+00> : vector<8x128xf32>
    %43 = tpu.matmul %33, %11, %cst_15 {dimension_numbers = #tpu.dot_dimension_numbers<[1], [0], [0], [1], [0, 0, 1, 1], [], []>} : vector<8x32xf32>, vector<32x128xf32>, vector<8x128xf32> -> vector<8x128xf32>
    %44 = arith.addf %42, %43 : vector<8x128xf32>
    %45 = arith.negf %44 : vector<8x128xf32>
    %46 = math.exp %45 : vector<8x128xf32>
    %cst_16 = arith.constant 1.000000e+00 : f32
    %47 = vector.broadcast %cst_16 : f32 to vector<8x128xf32>
    %48 = arith.addf %47, %46 : vector<8x128xf32>
    %49 = arith.divf %47, %48 : vector<8x128xf32>
    %50 = math.tanh %44 : vector<8x128xf32>
    %51 = vector.extract_strided_slice %49 {offsets = [0, 0], sizes = [8, 32], strides = [1, 1]} : vector<8x128xf32> to vector<8x32xf32>
    %52 = vector.extract_strided_slice %49 {offsets = [0, 32], sizes = [8, 32], strides = [1, 1]} : vector<8x128xf32> to vector<8x32xf32>
    %53 = vector.extract_strided_slice %50 {offsets = [0, 64], sizes = [8, 32], strides = [1, 1]} : vector<8x128xf32> to vector<8x32xf32>
    %54 = vector.extract_strided_slice %49 {offsets = [0, 96], sizes = [8, 32], strides = [1, 1]} : vector<8x128xf32> to vector<8x32xf32>
    %55 = arith.mulf %52, %31 : vector<8x32xf32>
    %56 = arith.mulf %51, %53 : vector<8x32xf32>
    %57 = arith.addf %55, %56 : vector<8x32xf32>
    %58 = math.tanh %57 : vector<8x32xf32>
    %59 = arith.mulf %54, %58 : vector<8x32xf32>
    %60 = vector.broadcast %c1_i32 : i32 to vector<8x1xi32>
    %61 = arith.cmpi eq, %10, %60 : vector<8x1xi32>
    %62 = vector.shape_cast %61 : vector<8x1xi1> to vector<8x1xi1>
    %63 = vector.broadcast %62 : vector<8x1xi1> to vector<8x32xi1>
    %64 = arith.select %63, %59, %38 : vector<8x32xi1>, vector<8x32xf32>
    %c2_i32 = arith.constant 2 : i32
    %c8_i32_17 = arith.constant 8 : i32
    %65 = arith.muli %c2_i32, %c8_i32_17 : i32
    %66 = tpu.assume_multiple %65, 8 : i32
    %67 = arith.index_cast %66 : i32 to index
    %c0_18 = arith.constant 0 : index
    %68 = vector.load %arg7[%67, %c0_18] : memref<64x128xf32, #tpu.memory_space<vmem>>, vector<8x128xf32>
    %cst_19 = arith.constant dense<0.000000e+00> : vector<8x128xf32>
    %69 = tpu.matmul %59, %11, %cst_19 {dimension_numbers = #tpu.dot_dimension_numbers<[1], [0], [0], [1], [0, 0, 1, 1], [], []>} : vector<8x32xf32>, vector<32x128xf32>, vector<8x128xf32> -> vector<8x128xf32>
    %70 = arith.addf %68, %69 : vector<8x128xf32>
    %71 = arith.negf %70 : vector<8x128xf32>
    %72 = math.exp %71 : vector<8x128xf32>
    %cst_20 = arith.constant 1.000000e+00 : f32
    %73 = vector.broadcast %cst_20 : f32 to vector<8x128xf32>
    %74 = arith.addf %73, %72 : vector<8x128xf32>
    %75 = arith.divf %73, %74 : vector<8x128xf32>
    %76 = math.tanh %70 : vector<8x128xf32>
    %77 = vector.extract_strided_slice %75 {offsets = [0, 0], sizes = [8, 32], strides = [1, 1]} : vector<8x128xf32> to vector<8x32xf32>
    %78 = vector.extract_strided_slice %75 {offsets = [0, 32], sizes = [8, 32], strides = [1, 1]} : vector<8x128xf32> to vector<8x32xf32>
    %79 = vector.extract_strided_slice %76 {offsets = [0, 64], sizes = [8, 32], strides = [1, 1]} : vector<8x128xf32> to vector<8x32xf32>
    %80 = vector.extract_strided_slice %75 {offsets = [0, 96], sizes = [8, 32], strides = [1, 1]} : vector<8x128xf32> to vector<8x32xf32>
    %81 = arith.mulf %78, %57 : vector<8x32xf32>
    %82 = arith.mulf %77, %79 : vector<8x32xf32>
    %83 = arith.addf %81, %82 : vector<8x32xf32>
    %84 = math.tanh %83 : vector<8x32xf32>
    %85 = arith.mulf %80, %84 : vector<8x32xf32>
    %86 = vector.broadcast %c2_i32 : i32 to vector<8x1xi32>
    %87 = arith.cmpi eq, %10, %86 : vector<8x1xi32>
    %88 = vector.shape_cast %87 : vector<8x1xi1> to vector<8x1xi1>
    %89 = vector.broadcast %88 : vector<8x1xi1> to vector<8x32xi1>
    %90 = arith.select %89, %85, %64 : vector<8x32xi1>, vector<8x32xf32>
    %c3_i32 = arith.constant 3 : i32
    %c8_i32_21 = arith.constant 8 : i32
    %91 = arith.muli %c3_i32, %c8_i32_21 : i32
    %92 = tpu.assume_multiple %91, 8 : i32
    %93 = arith.index_cast %92 : i32 to index
    %c0_22 = arith.constant 0 : index
    %94 = vector.load %arg7[%93, %c0_22] : memref<64x128xf32, #tpu.memory_space<vmem>>, vector<8x128xf32>
    %cst_23 = arith.constant dense<0.000000e+00> : vector<8x128xf32>
    %95 = tpu.matmul %85, %11, %cst_23 {dimension_numbers = #tpu.dot_dimension_numbers<[1], [0], [0], [1], [0, 0, 1, 1], [], []>} : vector<8x32xf32>, vector<32x128xf32>, vector<8x128xf32> -> vector<8x128xf32>
    %96 = arith.addf %94, %95 : vector<8x128xf32>
    %97 = arith.negf %96 : vector<8x128xf32>
    %98 = math.exp %97 : vector<8x128xf32>
    %cst_24 = arith.constant 1.000000e+00 : f32
    %99 = vector.broadcast %cst_24 : f32 to vector<8x128xf32>
    %100 = arith.addf %99, %98 : vector<8x128xf32>
    %101 = arith.divf %99, %100 : vector<8x128xf32>
    %102 = math.tanh %96 : vector<8x128xf32>
    %103 = vector.extract_strided_slice %101 {offsets = [0, 0], sizes = [8, 32], strides = [1, 1]} : vector<8x128xf32> to vector<8x32xf32>
    %104 = vector.extract_strided_slice %101 {offsets = [0, 32], sizes = [8, 32], strides = [1, 1]} : vector<8x128xf32> to vector<8x32xf32>
    %105 = vector.extract_strided_slice %102 {offsets = [0, 64], sizes = [8, 32], strides = [1, 1]} : vector<8x128xf32> to vector<8x32xf32>
    %106 = vector.extract_strided_slice %101 {offsets = [0, 96], sizes = [8, 32], strides = [1, 1]} : vector<8x128xf32> to vector<8x32xf32>
    %107 = arith.mulf %104, %83 : vector<8x32xf32>
    %108 = arith.mulf %103, %105 : vector<8x32xf32>
    %109 = arith.addf %107, %108 : vector<8x32xf32>
    %110 = math.tanh %109 : vector<8x32xf32>
    %111 = arith.mulf %106, %110 : vector<8x32xf32>
    %112 = vector.broadcast %c3_i32 : i32 to vector<8x1xi32>
    %113 = arith.cmpi eq, %10, %112 : vector<8x1xi32>
    %114 = vector.shape_cast %113 : vector<8x1xi1> to vector<8x1xi1>
    %115 = vector.broadcast %114 : vector<8x1xi1> to vector<8x32xi1>
    %116 = arith.select %115, %111, %90 : vector<8x32xi1>, vector<8x32xf32>
    %c4_i32 = arith.constant 4 : i32
    %c8_i32_25 = arith.constant 8 : i32
    %117 = arith.muli %c4_i32, %c8_i32_25 : i32
    %118 = tpu.assume_multiple %117, 8 : i32
    %119 = arith.index_cast %118 : i32 to index
    %c0_26 = arith.constant 0 : index
    %120 = vector.load %arg7[%119, %c0_26] : memref<64x128xf32, #tpu.memory_space<vmem>>, vector<8x128xf32>
    %cst_27 = arith.constant dense<0.000000e+00> : vector<8x128xf32>
    %121 = tpu.matmul %111, %11, %cst_27 {dimension_numbers = #tpu.dot_dimension_numbers<[1], [0], [0], [1], [0, 0, 1, 1], [], []>} : vector<8x32xf32>, vector<32x128xf32>, vector<8x128xf32> -> vector<8x128xf32>
    %122 = arith.addf %120, %121 : vector<8x128xf32>
    %123 = arith.negf %122 : vector<8x128xf32>
    %124 = math.exp %123 : vector<8x128xf32>
    %cst_28 = arith.constant 1.000000e+00 : f32
    %125 = vector.broadcast %cst_28 : f32 to vector<8x128xf32>
    %126 = arith.addf %125, %124 : vector<8x128xf32>
    %127 = arith.divf %125, %126 : vector<8x128xf32>
    %128 = math.tanh %122 : vector<8x128xf32>
    %129 = vector.extract_strided_slice %127 {offsets = [0, 0], sizes = [8, 32], strides = [1, 1]} : vector<8x128xf32> to vector<8x32xf32>
    %130 = vector.extract_strided_slice %127 {offsets = [0, 32], sizes = [8, 32], strides = [1, 1]} : vector<8x128xf32> to vector<8x32xf32>
    %131 = vector.extract_strided_slice %128 {offsets = [0, 64], sizes = [8, 32], strides = [1, 1]} : vector<8x128xf32> to vector<8x32xf32>
    %132 = vector.extract_strided_slice %127 {offsets = [0, 96], sizes = [8, 32], strides = [1, 1]} : vector<8x128xf32> to vector<8x32xf32>
    %133 = arith.mulf %130, %109 : vector<8x32xf32>
    %134 = arith.mulf %129, %131 : vector<8x32xf32>
    %135 = arith.addf %133, %134 : vector<8x32xf32>
    %136 = math.tanh %135 : vector<8x32xf32>
    %137 = arith.mulf %132, %136 : vector<8x32xf32>
    %138 = vector.broadcast %c4_i32 : i32 to vector<8x1xi32>
    %139 = arith.cmpi eq, %10, %138 : vector<8x1xi32>
    %140 = vector.shape_cast %139 : vector<8x1xi1> to vector<8x1xi1>
    %141 = vector.broadcast %140 : vector<8x1xi1> to vector<8x32xi1>
    %142 = arith.select %141, %137, %116 : vector<8x32xi1>, vector<8x32xf32>
    %c5_i32 = arith.constant 5 : i32
    %c8_i32_29 = arith.constant 8 : i32
    %143 = arith.muli %c5_i32, %c8_i32_29 : i32
    %144 = tpu.assume_multiple %143, 8 : i32
    %145 = arith.index_cast %144 : i32 to index
    %c0_30 = arith.constant 0 : index
    %146 = vector.load %arg7[%145, %c0_30] : memref<64x128xf32, #tpu.memory_space<vmem>>, vector<8x128xf32>
    %cst_31 = arith.constant dense<0.000000e+00> : vector<8x128xf32>
    %147 = tpu.matmul %137, %11, %cst_31 {dimension_numbers = #tpu.dot_dimension_numbers<[1], [0], [0], [1], [0, 0, 1, 1], [], []>} : vector<8x32xf32>, vector<32x128xf32>, vector<8x128xf32> -> vector<8x128xf32>
    %148 = arith.addf %146, %147 : vector<8x128xf32>
    %149 = arith.negf %148 : vector<8x128xf32>
    %150 = math.exp %149 : vector<8x128xf32>
    %cst_32 = arith.constant 1.000000e+00 : f32
    %151 = vector.broadcast %cst_32 : f32 to vector<8x128xf32>
    %152 = arith.addf %151, %150 : vector<8x128xf32>
    %153 = arith.divf %151, %152 : vector<8x128xf32>
    %154 = math.tanh %148 : vector<8x128xf32>
    %155 = vector.extract_strided_slice %153 {offsets = [0, 0], sizes = [8, 32], strides = [1, 1]} : vector<8x128xf32> to vector<8x32xf32>
    %156 = vector.extract_strided_slice %153 {offsets = [0, 32], sizes = [8, 32], strides = [1, 1]} : vector<8x128xf32> to vector<8x32xf32>
    %157 = vector.extract_strided_slice %154 {offsets = [0, 64], sizes = [8, 32], strides = [1, 1]} : vector<8x128xf32> to vector<8x32xf32>
    %158 = vector.extract_strided_slice %153 {offsets = [0, 96], sizes = [8, 32], strides = [1, 1]} : vector<8x128xf32> to vector<8x32xf32>
    %159 = arith.mulf %156, %135 : vector<8x32xf32>
    %160 = arith.mulf %155, %157 : vector<8x32xf32>
    %161 = arith.addf %159, %160 : vector<8x32xf32>
    %162 = math.tanh %161 : vector<8x32xf32>
    %163 = arith.mulf %158, %162 : vector<8x32xf32>
    %164 = vector.broadcast %c5_i32 : i32 to vector<8x1xi32>
    %165 = arith.cmpi eq, %10, %164 : vector<8x1xi32>
    %166 = vector.shape_cast %165 : vector<8x1xi1> to vector<8x1xi1>
    %167 = vector.broadcast %166 : vector<8x1xi1> to vector<8x32xi1>
    %168 = arith.select %167, %163, %142 : vector<8x32xi1>, vector<8x32xf32>
    %c6_i32 = arith.constant 6 : i32
    %c8_i32_33 = arith.constant 8 : i32
    %169 = arith.muli %c6_i32, %c8_i32_33 : i32
    %170 = tpu.assume_multiple %169, 8 : i32
    %171 = arith.index_cast %170 : i32 to index
    %c0_34 = arith.constant 0 : index
    %172 = vector.load %arg7[%171, %c0_34] : memref<64x128xf32, #tpu.memory_space<vmem>>, vector<8x128xf32>
    %cst_35 = arith.constant dense<0.000000e+00> : vector<8x128xf32>
    %173 = tpu.matmul %163, %11, %cst_35 {dimension_numbers = #tpu.dot_dimension_numbers<[1], [0], [0], [1], [0, 0, 1, 1], [], []>} : vector<8x32xf32>, vector<32x128xf32>, vector<8x128xf32> -> vector<8x128xf32>
    %174 = arith.addf %172, %173 : vector<8x128xf32>
    %175 = arith.negf %174 : vector<8x128xf32>
    %176 = math.exp %175 : vector<8x128xf32>
    %cst_36 = arith.constant 1.000000e+00 : f32
    %177 = vector.broadcast %cst_36 : f32 to vector<8x128xf32>
    %178 = arith.addf %177, %176 : vector<8x128xf32>
    %179 = arith.divf %177, %178 : vector<8x128xf32>
    %180 = math.tanh %174 : vector<8x128xf32>
    %181 = vector.extract_strided_slice %179 {offsets = [0, 0], sizes = [8, 32], strides = [1, 1]} : vector<8x128xf32> to vector<8x32xf32>
    %182 = vector.extract_strided_slice %179 {offsets = [0, 32], sizes = [8, 32], strides = [1, 1]} : vector<8x128xf32> to vector<8x32xf32>
    %183 = vector.extract_strided_slice %180 {offsets = [0, 64], sizes = [8, 32], strides = [1, 1]} : vector<8x128xf32> to vector<8x32xf32>
    %184 = vector.extract_strided_slice %179 {offsets = [0, 96], sizes = [8, 32], strides = [1, 1]} : vector<8x128xf32> to vector<8x32xf32>
    %185 = arith.mulf %182, %161 : vector<8x32xf32>
    %186 = arith.mulf %181, %183 : vector<8x32xf32>
    %187 = arith.addf %185, %186 : vector<8x32xf32>
    %188 = math.tanh %187 : vector<8x32xf32>
    %189 = arith.mulf %184, %188 : vector<8x32xf32>
    %190 = vector.broadcast %c6_i32 : i32 to vector<8x1xi32>
    %191 = arith.cmpi eq, %10, %190 : vector<8x1xi32>
    %192 = vector.shape_cast %191 : vector<8x1xi1> to vector<8x1xi1>
    %193 = vector.broadcast %192 : vector<8x1xi1> to vector<8x32xi1>
    %194 = arith.select %193, %189, %168 : vector<8x32xi1>, vector<8x32xf32>
    %c7_i32 = arith.constant 7 : i32
    %c8_i32_37 = arith.constant 8 : i32
    %195 = arith.muli %c7_i32, %c8_i32_37 : i32
    %196 = tpu.assume_multiple %195, 8 : i32
    %197 = arith.index_cast %196 : i32 to index
    %c0_38 = arith.constant 0 : index
    %198 = vector.load %arg7[%197, %c0_38] : memref<64x128xf32, #tpu.memory_space<vmem>>, vector<8x128xf32>
    %cst_39 = arith.constant dense<0.000000e+00> : vector<8x128xf32>
    %199 = tpu.matmul %189, %11, %cst_39 {dimension_numbers = #tpu.dot_dimension_numbers<[1], [0], [0], [1], [0, 0, 1, 1], [], []>} : vector<8x32xf32>, vector<32x128xf32>, vector<8x128xf32> -> vector<8x128xf32>
    %200 = arith.addf %198, %199 : vector<8x128xf32>
    %201 = arith.negf %200 : vector<8x128xf32>
    %202 = math.exp %201 : vector<8x128xf32>
    %cst_40 = arith.constant 1.000000e+00 : f32
    %203 = vector.broadcast %cst_40 : f32 to vector<8x128xf32>
    %204 = arith.addf %203, %202 : vector<8x128xf32>
    %205 = arith.divf %203, %204 : vector<8x128xf32>
    %206 = math.tanh %200 : vector<8x128xf32>
    %207 = vector.extract_strided_slice %205 {offsets = [0, 0], sizes = [8, 32], strides = [1, 1]} : vector<8x128xf32> to vector<8x32xf32>
    %208 = vector.extract_strided_slice %205 {offsets = [0, 32], sizes = [8, 32], strides = [1, 1]} : vector<8x128xf32> to vector<8x32xf32>
    %209 = vector.extract_strided_slice %206 {offsets = [0, 64], sizes = [8, 32], strides = [1, 1]} : vector<8x128xf32> to vector<8x32xf32>
    %210 = vector.extract_strided_slice %205 {offsets = [0, 96], sizes = [8, 32], strides = [1, 1]} : vector<8x128xf32> to vector<8x32xf32>
    %211 = arith.mulf %208, %187 : vector<8x32xf32>
    %212 = arith.mulf %207, %209 : vector<8x32xf32>
    %213 = arith.addf %211, %212 : vector<8x32xf32>
    %214 = math.tanh %213 : vector<8x32xf32>
    %215 = arith.mulf %210, %214 : vector<8x32xf32>
    %216 = vector.broadcast %c7_i32 : i32 to vector<8x1xi32>
    %217 = arith.cmpi eq, %10, %216 : vector<8x1xi32>
    %218 = vector.shape_cast %217 : vector<8x1xi1> to vector<8x1xi1>
    %219 = vector.broadcast %218 : vector<8x1xi1> to vector<8x32xi1>
    %220 = arith.select %219, %215, %194 : vector<8x32xi1>, vector<8x32xf32>
    %c8_i32_41 = arith.constant 8 : i32
    %c0_42 = arith.constant 0 : index
    %c0_43 = arith.constant 0 : index
    %221 = vector.load %arg4[%c0_42, %c0_43] : memref<32x128xf32, #tpu.memory_space<vmem>>, vector<32x128xf32>
    %cst_44 = arith.constant dense<0.000000e+00> : vector<8x128xf32>
    %222 = tpu.matmul %220, %221, %cst_44 {dimension_numbers = #tpu.dot_dimension_numbers<[1], [0], [0], [1], [0, 0, 1, 1], [], []>} : vector<8x32xf32>, vector<32x128xf32>, vector<8x128xf32> -> vector<8x128xf32>
    %c0_45 = arith.constant 0 : index
    %c0_46 = arith.constant 0 : index
    %223 = vector.load %arg5[%c0_45, %c0_46] : memref<1x128xf32, #tpu.memory_space<vmem>>, vector<1x128xf32>
    %224 = vector.broadcast %223 : vector<1x128xf32> to vector<8x128xf32>
    %225 = arith.addf %222, %224 : vector<8x128xf32>
    %cst_47 = arith.constant dense<0xFF800000> : vector<8xf32>
    %226 = vector.multi_reduction <maximumf>, %225, %cst_47 [1] : vector<8x128xf32> to vector<8xf32>
    %227 = vector.shape_cast %226 : vector<8xf32> to vector<8x1xf32>
    %228 = vector.broadcast %227 : vector<8x1xf32> to vector<8x128xf32>
    %229 = arith.subf %225, %228 : vector<8x128xf32>
    %230 = math.exp %229 : vector<8x128xf32>
    %cst_48 = arith.constant dense<0.000000e+00> : vector<8xf32>
    %231 = vector.multi_reduction <add>, %230, %cst_48 [1] : vector<8x128xf32> to vector<8xf32>
    %232 = vector.shape_cast %231 : vector<8xf32> to vector<8x1xf32>
    %233 = math.log %232 : vector<8x1xf32>
    %234 = vector.broadcast %233 : vector<8x1xf32> to vector<8x128xf32>
    %235 = arith.subf %229, %234 : vector<8x128xf32>
    %c0_49 = arith.constant 0 : index
    %c0_50 = arith.constant 0 : index
    %236 = vector.load %arg6[%c0_49, %c0_50] : memref<8x128xf32, #tpu.memory_space<vmem>>, vector<8x128xf32>
    tpu.vector_store %arg6[%c0_49, %c0_50], %235 {strides = array<i32>} : memref<8x128xf32, #tpu.memory_space<vmem>>, vector<8x128xf32>,
    return
  }
}

</mosaic_0001>

<bundles_post_ra>
// kernel: lstm_classifier_forward.1
= control target key start
LH: loop header
LB: loop body
LE: loop exit
PB: predicated region body
PF: predicated region fallthrough
CT: control target
= control target key end

     0   :  { %v1559_v0 = vmov 0   ;;  %v1560_v6 = vmov 0.0|0.0   ;;  %vm1561_vm0 = vmmov 0   ;;  %v1562_v12 = vmov 0.0   ;;  %s1565_s28 = smov 32   ;;  %s1840_s0 = inlined_call_operand.vmem [shape: s32[64,1], index: 0, kind: input, shape index: {}]   ;;  %s1841_s2 = inlined_call_operand.vmem [shape: bf16[128,128], index: 2, kind: input, shape index: {}]   ;;  %s1842_s3 = inlined_call_operand.vmem [shape: f32[32,128], index: 3, kind: input, shape index: {}]   ;;  %s1843_s1 = inlined_call_operand.vmem [shape: s32[8,1], index: 1, kind: input, shape index: {}]   ;;  %s1844_s4 = inlined_call_operand.vmem [shape: f32[32,128], index: 4, kind: input, shape index: {}]   ;;  %s1845_s5 = inlined_call_operand.vmem [shape: f32[1,128], index: 5, kind: input, shape index: {}]   ;;  %s1846_s6 = inlined_call_operand.vmem [shape: f32[8,128], index: 6, kind: output, shape index: {}]  }
   0x1   :  { %1482 = vset.pattern.permute.xlu1 %v1559_v0  ;;  %1481 = vset.pattern.permute.xlu0 %v1559_v0  ;;  %v26_v1 = vld [vmem:[%s1840_s0 + $0x10] sm:$0xff]  ;;  %v24_v2 = vld [vmem:[%s1840_s0] sm:$0xff]  ;;  %v27_v3 = vld [vmem:[%s1840_s0 + $0x18] sm:$0xff]  ;;  %v32_v21 = vlaneseq  ;;  %v1563_v27 = vmov 1.0|1.0   ;;  %vm229_vm7 = vcmask 261120  }
   0x2   :  { %41 = vperm.xlu1 %1482, %v26_v1   ;;  %35 = vperm.xlu0 %1481, %v24_v2   ;;  %v25_v4 = vld [vmem:[%s1840_s0 + $0x8] sm:$0xff]  ;;  %v1483_v5 = vld [vmem:[%s1841_s2] sm:$0xff]   ;;  %v1485_v8 = vld [vmem:[%s1841_s2 + $0x10] sm:$0xff]  }
   0x3   :  { %1420 = vmatprep.subr.bf16.mxu1 %v1560_v6  ;;  %v1484_v7 = vld [vmem:[%s1841_s2 + $0x8] sm:$0xff]   ;;  %1297 = vmatprep.subr.bf16.mxu0 %v1483_v5  ;;  %v224_v9 = vld [vmem:[%s1842_s3] sm:$0xff]  ;;  %v226_v13 = vld [vmem:[%s1842_s3 + $0x10] sm:$0xff]  ;;  %v1670_v24 = vand.u32 127, %v32_v21 }
   0x4   :  { %1298 = vmatpush3.bf16.msra.mxu0 %v1483_v5  ;;  %v225_v10 = vld [vmem:[%s1842_s3 + $0x8] sm:$0xff]  ;;  %1329 = vmatprep.mubr.msk.f32.mxu1 %vm1561_vm0, %v1562_v12  ;;  %v227_v14 = vld [vmem:[%s1842_s3 + $0x18] sm:$0xff]  ;;  %v1487_v17 = vld [vmem:[%s1841_s2 + $0x20] sm:$0xff]  }
   0x5   :  { %1299 = vmatprep.subr.bf16.mxu0 %v1484_v7  ;;  %v1631_v11 = vpack.c.bf16 %v225_v10, %v224_v9  ;;  %v1486_v15 = vld [vmem:[%s1841_s2 + $0x18] sm:$0xff]   ;;  %v1645_v16 = vpack.c.bf16 %v227_v14, %v226_v13  ;;  %v1488_v18 = vld [vmem:[%s1841_s2 + $0x28] sm:$0xff]   ;;  %v1489_v19 = vld [vmem:[%s1841_s2 + $0x30] sm:$0xff]  }
   0x6   :  { %44 = vperm.xlu1 %1482, %v27_v3   ;;  %38 = vperm.xlu0 %1481, %v25_v4   ;;  %v1490_v20 = vld [vmem:[%s1841_s2 + $0x38] sm:$0xff]   ;;  %s1564_s2 = smov 64  }
   0x7   :  { %1422 = vmatpush3.bf16.msra.mxu1 %v1631_v11 }
   0x8   :  { %1300 = vmatpush3.bf16.msra.mxu0 %v1484_v7  ;;  %1423 = vmatprep.subr.bf16.mxu1 %v1560_v6 }
   0x9   :  { %1301 = vmatprep.subr.bf16.mxu0 %v1485_v8 }
   0xb   :  { %1425 = vmatpush3.bf16.msra.mxu1 %v1645_v16 }
   0xc   :  { %1302 = vmatpush3.bf16.msra.mxu0 %v1485_v8  ;;  %1426 = vmatprep.subr.bf16.mxu1 %v1560_v6 }
   0xd   :  { %1303 = vmatprep.subr.bf16.mxu0 %v1486_v15 }
   0xe   :  { %1330 = vmatmul.mubr.f32.vlgmr.msra.gmra.mrb[0].mxu1 %v1562_v12 }
   0xf   :  { %1428 = vmatpush3.bf16.msra.mxu1 %v1631_v11  ;;  %1340 = vmatprep.mubr.msk.f32.mxu1 %vm1561_vm0, %v1562_v12 }
  0x10   :  { %1304 = vmatpush3.bf16.msra.mxu0 %v1486_v15  ;;  %1429 = vmatprep.subr.bf16.mxu1 %v1560_v6 }
  0x11   :  { %1305 = vmatprep.subr.bf16.mxu0 %v1487_v17 }
  0x13   :  { %1431 = vmatpush3.bf16.msra.mxu1 %v1645_v16 }
  0x14   :  { %1306 = vmatpush3.bf16.msra.mxu0 %v1487_v17  ;;  %1432 = vmatprep.subr.bf16.mxu1 %v1560_v6 }
  0x15   :  { %1307 = vmatprep.subr.bf16.mxu0 %v1488_v18 }
  0x18   :  { %1308 = vmatpush3.bf16.msra.mxu0 %v1488_v18 }
  0x19   :  { %1309 = vmatprep.subr.bf16.mxu0 %v1489_v19 }
  0x1c   :  { %1310 = vmatpush3.bf16.msra.mxu0 %v1489_v19 }
  0x1d   :  { %1311 = vmatprep.subr.bf16.mxu0 %v1490_v20 }
  0x20   :  { %1312 = vmatpush3.bf16.msra.mxu0 %v1490_v20 }
  0x21   :  { %1450 = vmatprep.subr.bf16.mxu0 %v1560_v6 }
  0x81   :  { %v42_v22 = vpop.permute.xlu1 %41  ;;  %v36_v23 = vpop.permute.xlu0 %35 }
  0x82   :  { %vm60_vm1 = vcmp.eq.s32.totalorder %v42_v22, %v1670_v24  ;;  %vm58_vm4 = vcmp.eq.s32.totalorder %v36_v23, %v1670_v24 }
  0x85   :  { %v45_v25 = vpop.permute.xlu1 %44  ;;  %v39_v26 = vpop.permute.xlu0 %38 }
  0x86   :  { %vm61_vm2 = vcmp.eq.s32.totalorder %v45_v25, %v1670_v24  ;;  %vm59_vm3 = vcmp.eq.s32.totalorder %v39_v26, %v1670_v24 }
  0x87   :  { %vm1217_vm5 = vmpackc.low %vm61_vm2, %vm60_vm1 }
  0x88   :  { %vm1215_vm6 = vmpackc.low %vm59_vm3, %vm58_vm4 }
  0x89   :  { %1313 = vmatprep.mubr.msk.bf16.mxu0 %vm1215_vm6, %v1563_v27 }
  0x8a   :  { %1314 = vmatmul.mubr.msk.bf16.vlgmr.msra.gmra.mrb[0].mxu0 %vm1217_vm5, %v1563_v27 }
  0x8b   :  { %1452 = vmatpush3.bf16.msra.mxu0 %v1631_v11 }
  0x8c   :  { %1453 = vmatprep.subr.bf16.mxu0 %v1560_v6 }
  0x8f   :  { %1455 = vmatpush3.bf16.msra.mxu0 %v1645_v16 }
  0x90   :  { %1462 = vmatprep.subr.bf16.mxu0 %v1560_v6 }
  0xe1   :  { %v299_v28 = vpop.f32.mrb[0].mxu1 }
  0xe2   :  { %v1331_v29 = vpop.f32.mrb[1].mxu1 }
 0x15d   :  { %v1682_v30 = vpop.f32.mrb[0].mxu0 }
 0x15e   :  { %v184_v31 = vpop.f32.mrb[1].mxu0 }
 0x15f   :  { %v303_v32 = vadd.f32 %v299_v28, %v184_v31  ;;  %v1684_v33 = vpop.f32.mrb[2].mxu0 }
 0x160   :  { %v187_v34 = vpop.f32.mrb[3].mxu0 }
 0x161   :  { %1491 = vtanh.f32 %v303_v32  ;;  %v1223_v36 = vmul.f32 -1.442695, %v303_v32 }
 0x163   :  { %1493 = vpow2.f32 %v1223_v36 }
 0x16b   :  { %v1492_v35 = vpop.eup %1491 }
 0x16c   :  { %313 = vrot.lane.b32.xlu0 %v1492_v35, %s1564_s2 }
 0x16d   :  { %v1494_v37 = vpop.eup %1493 }
 0x16e   :  { %v307_v38 = vadd.f32 1.0, %v1494_v37  ;;  %v28_v37 = vld [vmem:[%s1840_s0 + $0x20] sm:$0xff] }
 0x170   :  { %1495 = vrcp.f32 %v307_v38 }
 0x17a   :  { %v1496_v39 = vpop.eup %1495 }
 0x17b   :  { %v311_v42 = vmul.f32 0.0, %v1496_v39 }
 0x1de   :  { %v314_v40 = vpop.permute.xlu0 %313 }
 0x1df   :  { %v316_v41 = vmul.f32 %v1496_v39, %v314_v40 }
 0x1e1   :  { %318 = vrot.lane.b32.xlu1 %v316_v41, %s1565_s28 }
 0x253   :  { %v319_v43 = vpop.permute.xlu1 %318 }
 0x254   :  { %v321_v44 = vadd.f32 %v319_v43, %v311_v42  ;;  %v29_v42 = vld [vmem:[%s1840_s0 + $0x28] sm:$0xff]  ;;  %v31_v43 = vld [vmem:[%s1840_s0 + $0x38] sm:$0xff] }
 0x256   :  { %1497 = vtanh.f32 %v321_v44 }
 0x260   :  { %v1498_v45 = vpop.eup %1497 }
 0x261   :  { %324 = vrot.lane.b32.xlu0 %v1498_v45, %s1564_s2 }
 0x2d3   :  { %v325_v46 = vpop.permute.xlu0 %324 }
 0x2d4   :  { %v1689_v47 = vmul.f32 %v1496_v39, %v325_v46 }
 0x2d6   :  { %338 = vrot.lane.b32.xlu1 %v1689_v47, %s1565_s28 }
 0x348   :  { %v339_v48 = vpop.permute.xlu1 %338 }
 0x349   :  { %1341 = vmatmul.mubr.msk.f32.vlgmr.msra.gmra.mrb[2].mxu1 %vm229_vm7, %v339_v48 }
 0x34a   :  { %1434 = vmatpush3.bf16.msra.mxu1 %v1631_v11  ;;  %1351 = vmatprep.mubr.msk.f32.mxu1 %vm1561_vm0, %v1562_v12 }
 0x34b   :  { %1435 = vmatprep.subr.bf16.mxu1 %v1560_v6 }
 0x34e   :  { %1437 = vmatpush3.bf16.msra.mxu1 %v1645_v16 }
 0x34f   :  { %1438 = vmatprep.subr.bf16.mxu1 %v1560_v6 }
 0x41c   :  { %v408_v49 = vpop.f32.mrb[2].mxu1 }
 0x41d   :  { %v412_v50 = vadd.f32 %v408_v49, %v187_v34  ;;  %v1342_v51 = vpop.f32.mrb[3].mxu1 }
 0x41f   :  { %1499 = vtanh.f32 %v412_v50  ;;  %v1225_v53 = vmul.f32 -1.442695, %v412_v50 }
 0x421   :  { %1501 = vpow2.f32 %v1225_v53 }
 0x429   :  { %v1500_v52 = vpop.eup %1499 }
 0x42a   :  { %422 = vrot.lane.b32.xlu0 %v1500_v52, %s1564_s2 }
 0x42b   :  { %v1502_v54 = vpop.eup %1501 }
 0x42c   :  { %v416_v55 = vadd.f32 1.0, %v1502_v54 }
 0x42e   :  { %1503 = vrcp.f32 %v416_v55 }
 0x438   :  { %v1504_v56 = vpop.eup %1503 }
 0x439   :  { %v420_v59 = vmul.f32 %v1504_v56, %v321_v44 }
 0x49c   :  { %v423_v57 = vpop.permute.xlu0 %422 }
 0x49d   :  { %v425_v58 = vmul.f32 %v1504_v56, %v423_v57 }
 0x49f   :  { %427 = vrot.lane.b32.xlu1 %v425_v58, %s1565_s28 }
 0x511   :  { %v428_v60 = vpop.permute.xlu1 %427 }
 0x512   :  { %v430_v61 = vadd.f32 %v428_v60, %v420_v59 }
 0x514   :  { %1505 = vtanh.f32 %v430_v61 }
 0x51e   :  { %v1506_v62 = vpop.eup %1505 }
 0x51f   :  { %433 = vrot.lane.b32.xlu0 %v1506_v62, %s1564_s2 }
 0x591   :  { %v434_v63 = vpop.permute.xlu0 %433 }
 0x592   :  { %v1703_v1 = vmul.f32 %v1504_v56, %v434_v63 }
 0x594   :  { %447 = vrot.lane.b32.xlu1 %v1703_v1, %s1565_s28 }
 0x606   :  { %v448_v2 = vpop.permute.xlu1 %447 }
 0x607   :  { %1352 = vmatmul.mubr.msk.f32.vlgmr.msra.gmra.mrb[4].mxu1 %vm229_vm7, %v448_v2 }
 0x608   :  { %1440 = vmatpush3.bf16.msra.mxu1 %v1631_v11  ;;  %1362 = vmatprep.mubr.msk.f32.mxu1 %vm1561_vm0, %v1562_v12 }
 0x609   :  { %1441 = vmatprep.subr.bf16.mxu1 %v1560_v6 }
 0x60c   :  { %1443 = vmatpush3.bf16.msra.mxu1 %v1645_v16 }
 0x60d   :  { %1444 = vmatprep.subr.bf16.mxu1 %v1560_v6 }
 0x6da   :  { %v517_v3 = vpop.f32.mrb[4].mxu1 }
 0x6db   :  { %v521_v4 = vadd.f32 %v1682_v30, %v517_v3  ;;  %v1353_v5 = vpop.f32.mrb[5].mxu1 }
 0x6dd   :  { %1507 = vtanh.f32 %v521_v4  ;;  %v1227_v8 = vmul.f32 -1.442695, %v521_v4 }
 0x6df   :  { %1509 = vpow2.f32 %v1227_v8 }
 0x6e7   :  { %v1508_v7 = vpop.eup %1507 }
 0x6e8   :  { %531 = vrot.lane.b32.xlu0 %v1508_v7, %s1564_s2 }
 0x6e9   :  { %v1510_v9 = vpop.eup %1509 }
 0x6ea   :  { %v525_v10 = vadd.f32 1.0, %v1510_v9 }
 0x6ec   :  { %1511 = vrcp.f32 %v525_v10 }
 0x6f6   :  { %v1512_v13 = vpop.eup %1511 }
 0x6f7   :  { %v529_v17 = vmul.f32 %v1512_v13, %v430_v61 }
 0x75a   :  { %v532_v14 = vpop.permute.xlu0 %531 }
 0x75b   :  { %v534_v15 = vmul.f32 %v1512_v13, %v532_v14 }
 0x75d   :  { %536 = vrot.lane.b32.xlu1 %v534_v15, %s1565_s28 }
 0x7cf   :  { %v537_v18 = vpop.permute.xlu1 %536 }
 0x7d0   :  { %v539_v19 = vadd.f32 %v537_v18, %v529_v17 }
 0x7d2   :  { %1513 = vtanh.f32 %v539_v19 }
 0x7dc   :  { %v1514_v20 = vpop.eup %1513 }
 0x7dd   :  { %542 = vrot.lane.b32.xlu0 %v1514_v20, %s1564_s2 }
 0x84f   :  { %v543_v21 = vpop.permute.xlu0 %542 }
 0x850   :  { %v1718_v22 = vmul.f32 %v1512_v13, %v543_v21 }
 0x852   :  { %556 = vrot.lane.b32.xlu1 %v1718_v22, %s1565_s28 }
 0x8c4   :  { %v557_v23 = vpop.permute.xlu1 %556 }
 0x8c5   :  { %1363 = vmatmul.mubr.msk.f32.vlgmr.msra.gmra.mrb[6].mxu1 %vm229_vm7, %v557_v23 }
 0x8c6   :  { %1446 = vmatpush3.bf16.msra.mxu1 %v1631_v11  ;;  %1373 = vmatprep.mubr.msk.f32.mxu1 %vm1561_vm0, %v1562_v12 }
 0x8c7   :  { %1447 = vmatprep.subr.bf16.mxu1 %v1560_v6 }
 0x8ca   :  { %1449 = vmatpush3.bf16.msra.mxu1 %v1645_v16 }
 0x8cb   :  { %1456 = vmatprep.subr.bf16.mxu1 %v1560_v6 }
 0x998   :  { %v626_v25 = vpop.f32.mrb[6].mxu1 }
 0x999   :  { %v630_v26 = vadd.f32 %v1684_v33, %v626_v25  ;;  %v1364_v28 = vpop.f32.mrb[7].mxu1  ;;  %v30_v33 = vld [vmem:[%s1840_s0 + $0x30] sm:$0xff] }
 0x99b   :  { %1515 = vtanh.f32 %v630_v26  ;;  %v1229_v30 = vmul.f32 -1.442695, %v630_v26 }
 0x99d   :  { %1517 = vpow2.f32 %v1229_v30 }
 0x9a5   :  { %v1516_v29 = vpop.eup %1515 }
 0x9a6   :  { %640 = vrot.lane.b32.xlu0 %v1516_v29, %s1564_s2 }
 0x9a7   :  { %v1518_v31 = vpop.eup %1517 }
 0x9a8   :  { %v634_v32 = vadd.f32 1.0, %v1518_v31 }
 0x9aa   :  { %1519 = vrcp.f32 %v634_v32 }
 0x9b4   :  { %v1520_v34 = vpop.eup %1519 }
 0x9b5   :  { %v638_v38 = vmul.f32 %v1520_v34, %v539_v19 }
 0xa18   :  { %v641_v35 = vpop.permute.xlu0 %640 }
 0xa19   :  { %v643_v36 = vmul.f32 %v1520_v34, %v641_v35 }
 0xa1b   :  { %645 = vrot.lane.b32.xlu1 %v643_v36, %s1565_s28 }
 0xa1f   :  { %47 = vperm.xlu1 %1482, %v28_v37  }
 0xa23   :  { %53 = vperm.xlu1 %1482, %v30_v33  }
 0xa8d   :  { %v646_v39 = vpop.permute.xlu1 %645 }
 0xa8e   :  { %v648_v40 = vadd.f32 %v646_v39, %v638_v38 }
 0xa90   :  { %1521 = vtanh.f32 %v648_v40 }
 0xa9a   :  { %v1522_v41 = vpop.eup %1521 }
 0xa9b   :  { %651 = vrot.lane.b32.xlu0 %v1522_v41, %s1564_s2 }
 0xa9e   :  { %v48_v46 = vpop.permute.xlu1 %47 }
 0xa9f   :  { %50 = vperm.xlu0 %1481, %v29_v42   ;;  %vm62_vm8 = vcmp.eq.s32.totalorder %v48_v46, %v1670_v24 }
 0xaa2   :  { %v54_v49 = vpop.permute.xlu1 %53 }
 0xaa3   :  { %56 = vperm.xlu0 %1481, %v31_v43   ;;  %vm64_vm11 = vcmp.eq.s32.totalorder %v54_v49, %v1670_v24 }
 0xb0d   :  { %v652_v44 = vpop.permute.xlu0 %651 }
 0xb0e   :  { %v1745_v45 = vmul.f32 %v1520_v34, %v652_v44 }
 0xb10   :  { %665 = vrot.lane.b32.xlu1 %v1745_v45, %s1565_s28 }
 0xb1e   :  { %v51_v48 = vpop.permute.xlu0 %50 }
 0xb1f   :  { %vm63_vm9 = vcmp.eq.s32.totalorder %v51_v48, %v1670_v24 }
 0xb20   :  { %vm1219_vm10 = vmpackc.low %vm63_vm9, %vm62_vm8 }
 0xb21   :  { %1317 = vmatprep.mubr.msk.bf16.mxu0 %vm1219_vm10, %v1563_v27 }
 0xb22   :  { %v57_v50 = vpop.permute.xlu0 %56 }
 0xb23   :  { %vm65_vm12 = vcmp.eq.s32.totalorder %v57_v50, %v1670_v24 }
 0xb24   :  { %vm1221_vm13 = vmpackc.low %vm65_vm12, %vm64_vm11 }
 0xb25   :  { %1318 = vmatmul.mubr.msk.bf16.gmra.mrb[4].mxu0 %vm1221_vm13, %v1563_v27 }
 0xb26   :  { %1384 = vmatprep.mubr.msk.f32.mxu0 %vm1561_vm0, %v1562_v12 }
 0xb82   :  { %v666_v51 = vpop.permute.xlu1 %665 }
 0xb83   :  { %1374 = vmatmul.mubr.msk.f32.vlgmr.msra.gmra.mrb[8].mxu1 %vm229_vm7, %v666_v51 }
 0xb84   :  { %1458 = vmatpush3.bf16.msra.mxu1 %v1631_v11  ;;  %1395 = vmatprep.mubr.msk.f32.mxu1 %vm1561_vm0, %v1562_v12 }
 0xb85   :  { %1459 = vmatprep.subr.bf16.mxu1 %v1560_v6 }
 0xb88   :  { %1461 = vmatpush3.bf16.msra.mxu1 %v1645_v16 }
 0xb89   :  { %1468 = vmatprep.subr.bf16.mxu1 %v1560_v6 }
 0xbf8   :  { %v1319_v24 = vpop.f32.mrb[4].mxu0 }
 0xbf9   :  { %v200_v52 = vpop.f32.mrb[5].mxu0 }
 0xbfa   :  { %v1764_v27 = vpop.f32.mrb[6].mxu0 }
 0xbfb   :  { %v203_v53 = vpop.f32.mrb[7].mxu0 }
 0xc56   :  { %v735_v54 = vpop.f32.mrb[8].mxu1 }
 0xc57   :  { %v739_v55 = vadd.f32 %v735_v54, %v200_v52  ;;  %v1375_v56 = vpop.f32.mrb[9].mxu1 }
 0xc59   :  { %1523 = vtanh.f32 %v739_v55  ;;  %v1231_v58 = vmul.f32 -1.442695, %v739_v55 }
 0xc5b   :  { %1525 = vpow2.f32 %v1231_v58 }
 0xc63   :  { %v1524_v57 = vpop.eup %1523 }
 0xc64   :  { %749 = vrot.lane.b32.xlu0 %v1524_v57, %s1564_s2 }
 0xc65   :  { %v1526_v59 = vpop.eup %1525 }
 0xc66   :  { %v743_v60 = vadd.f32 1.0, %v1526_v59 }
 0xc68   :  { %1527 = vrcp.f32 %v743_v60 }
 0xc72   :  { %v1528_v61 = vpop.eup %1527 }
 0xc73   :  { %v747_v2 = vmul.f32 %v1528_v61, %v648_v40 }
 0xcd6   :  { %v750_v62 = vpop.permute.xlu0 %749 }
 0xcd7   :  { %v752_v63 = vmul.f32 %v1528_v61, %v750_v62 }
 0xcd9   :  { %754 = vrot.lane.b32.xlu1 %v752_v63, %s1565_s28 }
 0xd4b   :  { %v755_v3 = vpop.permute.xlu1 %754 }
 0xd4c   :  { %v757_v4 = vadd.f32 %v755_v3, %v747_v2 }
 0xd4e   :  { %1529 = vtanh.f32 %v757_v4 }
 0xd58   :  { %v1530_v5 = vpop.eup %1529 }
 0xd59   :  { %760 = vrot.lane.b32.xlu0 %v1530_v5, %s1564_s2 }
 0xdcb   :  { %v761_v7 = vpop.permute.xlu0 %760 }
 0xdcc   :  { %v1769_v8 = vmul.f32 %v1528_v61, %v761_v7 }
 0xdce   :  { %774 = vrot.lane.b32.xlu1 %v1769_v8, %s1565_s28 }
 0xe40   :  { %v775_v9 = vpop.permute.xlu1 %774 }
 0xe41   :  { %1385 = vmatmul.mubr.msk.f32.vlgmr.msra.gmra.mrb[8].mxu0 %vm229_vm7, %v775_v9  ;;  %v1098_v9 = vld [vmem:[%s1844_s4] sm:$0xff] }
 0xe42   :  { %1464 = vmatpush3.bf16.msra.mxu0 %v1631_v11  ;;  %1406 = vmatprep.mubr.msk.f32.mxu0 %vm1561_vm0, %v1562_v12 }
 0xe43   :  { %1465 = vmatprep.subr.bf16.mxu0 %v1560_v6 }
 0xe46   :  { %1467 = vmatpush3.bf16.msra.mxu0 %v1645_v16 }
 0xf14   :  { %v844_v10 = vpop.f32.mrb[8].mxu0 }
 0xf15   :  { %v848_v13 = vadd.f32 %v844_v10, %v203_v53  ;;  %v1386_v14 = vpop.f32.mrb[9].mxu0  ;;  %v1099_v10 = vld [vmem:[%s1844_s4 + $0x8] sm:$0xff] }
 0xf16   :  { %v1469_v14 = vpack.c.bf16 %v1099_v10, %v1098_v9 }
 0xf17   :  { %1531 = vtanh.f32 %v848_v13  ;;  %v1233_v17 = vmul.f32 -1.442695, %v848_v13  ;;  %v1100_v13 = vld [vmem:[%s1844_s4 + $0x10] sm:$0xff] }
 0xf19   :  { %1533 = vpow2.f32 %v1233_v17 }
 0xf21   :  { %v1532_v15 = vpop.eup %1531 }
 0xf22   :  { %858 = vrot.lane.b32.xlu0 %v1532_v15, %s1564_s2 }
 0xf23   :  { %v1534_v18 = vpop.eup %1533 }
 0xf24   :  { %v852_v19 = vadd.f32 1.0, %v1534_v18 }
 0xf26   :  { %1535 = vrcp.f32 %v852_v19 }
 0xf30   :  { %v1536_v11 = vpop.eup %1535 }
 0xf31   :  { %v856_v23 = vmul.f32 %v1536_v11, %v757_v4 }
 0xf94   :  { %v859_v20 = vpop.permute.xlu0 %858 }
 0xf95   :  { %v861_v21 = vmul.f32 %v1536_v11, %v859_v20 }
 0xf97   :  { %863 = vrot.lane.b32.xlu1 %v861_v21, %s1565_s28 }
0x1009   :  { %v864_v25 = vpop.permute.xlu1 %863 }
0x100a   :  { %v866_v16 = vadd.f32 %v864_v25, %v856_v23 }
0x100c   :  { %1537 = vtanh.f32 %v866_v16 }
0x1016   :  { %v1538_v26 = vpop.eup %1537 }
0x1017   :  { %869 = vrot.lane.b32.xlu0 %v1538_v26, %s1564_s2 }
0x1089   :  { %v870_v28 = vpop.permute.xlu0 %869 }
0x108a   :  { %v1782_v29 = vmul.f32 %v1536_v11, %v870_v28 }
0x108c   :  { %883 = vrot.lane.b32.xlu1 %v1782_v29, %s1565_s28 }
0x10fe   :  { %v884_v30 = vpop.permute.xlu1 %883 }
0x10ff   :  { %1396 = vmatmul.mubr.msk.f32.vlgmr.msra.gmra.mrb[10].mxu1 %vm229_vm7, %v884_v30 }
0x1100   :  { %1417 = vmatprep.mubr.msk.f32.mxu1 %vm1561_vm0, %v1562_v12  ;;  %1470 = vmatpush3.bf16.msra.mxu1 %v1469_v14 }
0x1101   :  { %1471 = vmatprep.subr.bf16.mxu1 %v1560_v6 }
0x11d2   :  { %v953_v31 = vpop.f32.mrb[10].mxu1 }
0x11d3   :  { %v957_v32 = vadd.f32 %v1319_v24, %v953_v31  ;;  %v1397_v34 = vpop.f32.mrb[11].mxu1  ;;  %v223_v24 = vld [vmem:[%s1843_s1] sm:$0xff] }
0x11d4   :  { %vm328_vm14 = vcmp.eq.s32.totalorder %v223_v24, 0  ;;  %vm546_vm15 = vcmp.eq.s32.totalorder %v223_v24, 2  ;;  %vm764_vm0 = vcmp.eq.s32.totalorder %v223_v24, 4  ;;  %vm982_vm1 = vcmp.eq.s32.totalorder %v223_v24, 6 }
0x11d5   :  { %1539 = vtanh.f32 %v957_v32  ;;  %v1235_v36 = vmul.f32 -1.442695, %v957_v32  ;;  %v329_v53 = vsel %vm328_vm14, 1, %v1559_v0  ;;  %v547_v54 = vsel %vm546_vm15, 1, %v1559_v0 }
0x11d6   :  { %v983_v55 = vsel %vm982_vm1, 1, %v1559_v0  ;;  %vm437_vm2 = vcmp.eq.s32.totalorder %v223_v24, 1  ;;  %vm655_vm3 = vcmp.eq.s32.totalorder %v223_v24, 3  ;;  %vm873_vm4 = vcmp.eq.s32.totalorder %v223_v24, 5 }
0x11d7   :  { %1541 = vpow2.f32 %v1235_v36  ;;  %v438_v62 = vsel %vm437_vm2, 1, %v1559_v0  ;;  %v656_v63 = vsel %vm655_vm3, 1, %v1559_v0  ;;  %v874_v2 = vsel %vm873_vm4, 1, %v1559_v0 }
0x11d8   :  { %vm1091_vm5 = vcmp.eq.s32.totalorder %v223_v24, 7 }
0x11d9   :  { %v1092_v3 = vsel %vm1091_vm5, 1, %v1559_v0 }
0x11df   :  { %v1540_v35 = vpop.eup %1539 }
0x11e0   :  { %967 = vrot.lane.b32.xlu0 %v1540_v35, %s1564_s2 }
0x11e1   :  { %v1542_v37 = vpop.eup %1541 }
0x11e2   :  { %v961_v33 = vadd.f32 1.0, %v1542_v37 }
0x11e4   :  { %1543 = vrcp.f32 %v961_v33 }
0x11ee   :  { %v1544_v38 = vpop.eup %1543 }
0x11ef   :  { %v965_v41 = vmul.f32 %v1544_v38, %v866_v16 }
0x1252   :  { %v968_v39 = vpop.permute.xlu0 %967 }
0x1253   :  { %v970_v40 = vmul.f32 %v1544_v38, %v968_v39 }
0x1255   :  { %972 = vrot.lane.b32.xlu1 %v970_v40, %s1565_s28 }
0x12c7   :  { %v973_v42 = vpop.permute.xlu1 %972 }
0x12c8   :  { %v975_v12 = vadd.f32 %v973_v42, %v965_v41 }
0x12ca   :  { %1545 = vtanh.f32 %v975_v12 }
0x12d4   :  { %v1546_v43 = vpop.eup %1545 }
0x12d5   :  { %978 = vrot.lane.b32.xlu0 %v1546_v43, %s1564_s2 }
0x1347   :  { %v979_v44 = vpop.permute.xlu0 %978 }
0x1348   :  { %v1792_v46 = vmul.f32 %v1544_v38, %v979_v44 }
0x134a   :  { %992 = vrot.lane.b32.xlu1 %v1792_v46, %s1565_s28 }
0x13bc   :  { %v993_v48 = vpop.permute.xlu1 %992 }
0x13bd   :  { %1407 = vmatmul.mubr.msk.f32.vlgmr.msra.gmra.mrb[10].mxu0 %vm229_vm7, %v993_v48 }
0x1490   :  { %v1062_v49 = vpop.f32.mrb[10].mxu0 }
0x1491   :  { %v1066_v50 = vadd.f32 %v1764_v27, %v1062_v49  ;;  %v1408_v51 = vpop.f32.mrb[11].mxu0  ;;  %v765_v27 = vsel %vm764_vm0, 1, %v1559_v0  ;;  %v1101_v0 = vld [vmem:[%s1844_s4 + $0x18] sm:$0xff] }
0x1492   :  { %v1472_v15 = vpack.c.bf16 %v1101_v0, %v1100_v13 }
0x1493   :  { %1547 = vtanh.f32 %v1066_v50  ;;  %v1237_v56 = vmul.f32 -1.442695, %v1066_v50 }
0x1494   :  { %1473 = vmatpush3.bf16.msra.mxu1 %v1472_v15 }
0x1495   :  { %1549 = vpow2.f32 %v1237_v56 }
0x149d   :  { %v1548_v52 = vpop.eup %1547 }
0x149e   :  { %1076 = vrot.lane.b32.xlu0 %v1548_v52, %s1564_s2 }
0x149f   :  { %v1550_v57 = vpop.eup %1549 }
0x14a0   :  { %v1070_v58 = vadd.f32 1.0, %v1550_v57 }
0x14a2   :  { %331 = vperm.xlu0 %1481, %v329_v53   ;;  %1551 = vrcp.f32 %v1070_v58 }
0x14a6   :  { %549 = vperm.xlu0 %1481, %v547_v54  }
0x14aa   :  { %767 = vperm.xlu0 %1481, %v765_v27  }
0x14ac   :  { %v1552_v59 = vpop.eup %1551 }
0x14ad   :  { %v1074_v4 = vmul.f32 %v1552_v59, %v975_v12 }
0x14ae   :  { %985 = vperm.xlu0 %1481, %v983_v55  }
0x1510   :  { %v1077_v60 = vpop.permute.xlu0 %1076 }
0x1511   :  { %v1079_v61 = vmul.f32 %v1552_v59, %v1077_v60 }
0x1513   :  { %1081 = vrot.lane.b32.xlu1 %v1079_v61, %s1565_s28 }
0x1517   :  { %440 = vperm.xlu1 %1482, %v438_v62  }
0x151b   :  { %658 = vperm.xlu1 %1482, %v656_v63  }
0x151f   :  { %876 = vperm.xlu1 %1482, %v874_v2  }
0x1521   :  { %v332_v18 = vpop.permute.xlu0 %331 }
0x1522   :  { %vm333_vm6 = vcmp.eq.s32.totalorder %v332_v18, 1 }
0x1523   :  { %1094 = vperm.xlu1 %1482, %v1092_v3   ;;  %v334_v21 = vsel %vm333_vm6, %v1689_v47, 0.0 }
0x1525   :  { %v550_v11 = vpop.permute.xlu0 %549 }
0x1526   :  { %vm551_vm10 = vcmp.eq.s32.totalorder %v550_v11, 1 }
0x1529   :  { %v768_v23 = vpop.permute.xlu0 %767 }
0x152a   :  { %vm769_vm12 = vcmp.eq.s32.totalorder %v768_v23, 1 }
0x152d   :  { %v986_v28 = vpop.permute.xlu0 %985 }
0x152e   :  { %vm987_vm13 = vcmp.eq.s32.totalorder %v986_v28, 1 }
0x1585   :  { %v1082_v5 = vpop.permute.xlu1 %1081 }
0x1586   :  { %v1084_v7 = vadd.f32 %v1082_v5, %v1074_v4 }
0x1588   :  { %1553 = vtanh.f32 %v1084_v7 }
0x1592   :  { %v1554_v17 = vpop.eup %1553 }
0x1593   :  { %1087 = vrot.lane.b32.xlu0 %v1554_v17, %s1564_s2 }
0x1596   :  { %v441_v19 = vpop.permute.xlu1 %440 }
0x1597   :  { %vm442_vm8 = vcmp.eq.s32.totalorder %v441_v19, 1 }
0x1598   :  { %v443_v25 = vsel %vm442_vm8, %v1703_v1, %v334_v21 }
0x1599   :  { %v552_v6 = vsel %vm551_vm10, %v1718_v22, %v443_v25 }
0x159a   :  { %v659_v20 = vpop.permute.xlu1 %658 }
0x159b   :  { %vm660_vm9 = vcmp.eq.s32.totalorder %v659_v20, 1 }
0x159c   :  { %v661_v26 = vsel %vm660_vm9, %v1745_v45, %v552_v6  ;;  %v1238_v45 = vld [vmem:[%s1845_s5] ss:$0 sm:$0xff] }
0x159d   :  { %v770_v30 = vsel %vm769_vm12, %v1769_v8, %v661_v26 }
0x159e   :  { %v877_v16 = vpop.permute.xlu1 %876 }
0x159f   :  { %vm878_vm11 = vcmp.eq.s32.totalorder %v877_v16, 1 }
0x15a0   :  { %v879_v31 = vsel %vm878_vm11, %v1782_v29, %v770_v30 }
0x15a1   :  { %v988_v1 = vsel %vm987_vm13, %v1792_v46, %v879_v31 }
0x15a2   :  { %v1095_v32 = vpop.permute.xlu1 %1094 }
0x15a3   :  { %vm1096_vm14 = vcmp.eq.s32.totalorder %v1095_v32, 1 }
0x1605   :  { %v1088_v34 = vpop.permute.xlu0 %1087 }
0x1606   :  { %v1090_v47 = vmul.f32 %v1552_v59, %v1088_v34 }
0x1608   :  { %v1097_v35 = vsel %vm1096_vm14, %v1090_v47, %v988_v1 }
0x1609   :  { %1110 = vrot.lane.b32.xlu1 %v1097_v35, %s1565_s28 }
0x167b   :  { %v1111_v22 = vpop.permute.xlu1 %1110 }
0x167c   :  { %1418 = vmatmul.mubr.msk.f32.vlgmr.msra.gmra.mrb[12].mxu1 %vm229_vm7, %v1111_v22 }
0x174f   :  { %v1180_v8 = vpop.f32.mrb[12].mxu1 }
0x1750   :  { %v1181_v36 = vadd.f32 %v1238_v45, %v1180_v8  ;;  %v1419_v29 = vpop.f32.mrb[13].mxu1 }
0x1752   :  { %1184 = vmax.xlane.f32.xlu0 %v1181_v36 }
0x17df   :  { %v1185_v37 = vpop.xlane.xlu0 %1184 }
0x17e0   :  { %v1186_v33 = vsub.f32 %v1181_v36, %v1185_v37 }
0x17e2   :  { %v1187_v38 = vmul.f32 1.442695, %v1186_v33 }
0x17e4   :  { %1555 = vpow2.f32 %v1187_v38 }
0x17ee   :  { %v1556_v39 = vpop.eup %1555 }
0x17ef   :  { %1189 = vadd.xlane.f32.xlu1 %v1556_v39 }
0x187c   :  { %v1190_v40 = vpop.xlane.xlu1 %1189 }
0x187d   :  { %1557 = vlog2.f32 %v1190_v40 }
0x1887   :  { %v1558_v41 = vpop.eup %1557 }
0x1888   :  { %v1192_v42 = vmul.f32 0.6931472, %v1558_v41 }
0x188a   :  { %v1193_v12 = vsub.f32 %v1186_v33, %v1192_v42 }
0x188c   :  { %1194 = vst [vmem:[%s1846_s6] sm:$0xff] %v1193_v12 }

</bundles_post_ra>
